<compile_context>
chip_gen: v5e
topology: v5e:2x2
jax: 0.10.0
libtpu: 0.0.40
codegen_flags: <defaults>
</compile_context>

<pallas_src>
import functools

import jax
import jax.numpy as jnp
import numpy as np
from jax.experimental import pallas as pl
from jax.experimental.pallas import tpu as pltpu


# ------------------------------ Pallas kernel ------------------------------ #

def _resblock_kernel(*refs, cin, identity_skip):
    """Fused ResBlock on one lane tile of the flattened pixel axis.

    Refs (channels on sublanes, pixels on lanes):
      cols : (9*Cin, TP)  im2col slab, rows ordered (kh, kw, ci), stride pre-applied
      w1   : (Cout, 9*Cin) BN1-folded 3x3 conv
      b1   : (Cout, 1)     f32
      w2   : (Cout, Cout)  BN2-folded 1x1 conv
      b2   : (Cout, 1)     f32
      [ws  : (Cout, Cin)   BN_s-folded skip 1x1 conv]   (projection skip only)
      [bs  : (Cout, 1)     f32]
      out  : (Cout, TP)
    """
    if identity_skip:
        cols_ref, w1_ref, b1_ref, w2_ref, b2_ref, o_ref = refs
        ws_ref = bs_ref = None
    else:
        cols_ref, w1_ref, b1_ref, w2_ref, b2_ref, ws_ref, bs_ref, o_ref = refs

    cols = cols_ref[...]                                   # (9*Cin, TP), compute dtype
    w1 = w1_ref[...]                                       # (Cout, 9*Cin)
    w2 = w2_ref[...]                                       # (Cout, Cout)

    # conv3x3 (+BN1 folded) as a single K=9*Cin MXU dot, f32 accumulate, then ReLU.
    h = jnp.dot(w1, cols, preferred_element_type=jnp.float32) + b1_ref[...]
    h = jnp.maximum(h, 0.0)                                # (Cout, TP) f32

    # conv1x1 (+BN2 folded).
    y2 = jnp.dot(w2, h.astype(w2.dtype),
                 preferred_element_type=jnp.float32) + b2_ref[...]

    # Skip branch: the center im2col tap (kh=kw=1) IS the (strided) input interior,
    # so the residual input never leaves VMEM and needs no extra HBM read.
    xin = cols[4 * cin:5 * cin, :]                         # (Cin, TP)
    if identity_skip:
        sk = xin.astype(jnp.float32)                       # stride==1, Cin==Cout
    else:
        sk = jnp.dot(ws_ref[...], xin,
                     preferred_element_type=jnp.float32) + bs_ref[...]

    o_ref[...] = jnp.maximum(y2 + sk, 0.0).astype(o_ref.dtype)


# ------------------------------ Pallas wrapper ------------------------------ #

def _pick_pixel_tile(np_pad, bytes_per_px, budget_bytes):
    """Largest multiple-of-128 divisor of np_pad fitting the VMEM budget; prefer a
    grid >= 2 (v7x dual TensorCore / DMA-compute pipelining) when the tile can stay
    >= 256 lanes."""
    q = np_pad // 128
    divs = [d for d in range(1, q + 1) if q % d == 0]
    fit = [d for d in divs if 128 * d * bytes_per_px <= budget_bytes] or [1]
    multi = [d for d in fit if d < q and d >= 2]           # grid >= 2, tile >= 256 lanes
    d = max(multi) if multi else max(fit)
    return 128 * d


def resblock_forward(params, x_nchw, *, compute_dtype=jnp.float32):
    """Fused Pallas ResBlock forward.  x_nchw: (N, Cin, H, W) -> (N, Cout, Ho, Wo)."""
    N, Cin, H, W = x_nchw.shape
    Cout = params["w1"].shape[0]
    stride = int(params["stride"])
    assert H % stride == 0 and W % stride == 0
    Ho, Wo = H // stride, W // stride
    Mo = Ho * Wo
    cd = jnp.dtype(compute_dtype)
    identity_skip = "ws" not in params

    # --- wrapper-side im2col, channels-major, stride folded in (XLA fuses this) -----
    # cols[(kh*3+kw)*Cin + ci, n*Mo + ho*Wo + wo] = x_pad[n, ci, ho*stride+kh, wo*stride+kw]
    xp = jnp.pad(x_nchw, ((0, 0), (0, 0), (1, 1), (1, 1)))
    taps = [xp[:, :, kh:kh + H:stride, kw:kw + W:stride]
            for kh in range(3) for kw in range(3)]                   # 9 x (N,Cin,Ho,Wo)
    cols = jnp.stack(taps, axis=1).reshape(N, 9 * Cin, Mo)           # tap-major rows
    cols = jnp.transpose(cols, (1, 0, 2)).reshape(9 * Cin, N * Mo).astype(cd)

    NP = N * Mo
    NPp = int(pl.cdiv(NP, 128)) * 128                 # lane-dense pixel axis
    if NPp != NP:
        cols = jnp.pad(cols, ((0, 0), (0, NPp - NP)))

    # --- fold BN scales into the conv weights (tiny, wrapper-side) ------------------
    s1, b1 = params["bn1"]
    s2, b2 = params["bn2"]
    w1m = jnp.transpose(params["w1"], (0, 2, 3, 1)).reshape(Cout, 9 * Cin)
    w1f = (w1m * s1[:, None]).astype(cd)
    w2f = (params["w2"] * s2[:, None]).astype(cd)
    b1c = b1.reshape(Cout, 1).astype(jnp.float32)
    b2c = b2.reshape(Cout, 1).astype(jnp.float32)

    args = [cols, w1f, b1c, w2f, b2c]
    weight_bytes = 2 * (w1f.size + w2f.size) * cd.itemsize + 2 * (b1c.size + b2c.size) * 4
    if not identity_skip:
        ss, sb = params["bn_s"]
        wsf = (params["ws"] * ss[:, None]).astype(cd)
        bsc = sb.reshape(Cout, 1).astype(jnp.float32)
        args += [wsf, bsc]
        weight_bytes += 2 * (wsf.size * cd.itemsize + bsc.size * 4)

    # --- per-generation VMEM budget (honest accounting) -----------------------------
    out_isz = jnp.dtype(x_nchw.dtype).itemsize
    per_px = (2 * (9 * Cin * cd.itemsize + Cout * out_isz)        # double-buffered blocks
              + 4 * (2 * Cout + max(Cin, Cout)))                  # f32 h / y2 / skip
    try:
        vmem_cap = int(pltpu.get_tpu_info().vmem_capacity_bytes)  # 128 MiB v5e/v6e, 64 v7x
    except Exception:
        vmem_cap = 64 * 1024 * 1024                               # v7x-safe fallback
    budget = max(8 * 1024 * 1024, (vmem_cap * 3) // 8)            # ~48 MiB v5e/v6e, ~24 v7x
    vmem_limit = int(min((vmem_cap * 3) // 4, 112 * 1024 * 1024))

    TP = _pick_pixel_tile(NPp, per_px, budget - weight_bytes)

    in_specs = [
        pl.BlockSpec((9 * Cin, TP), lambda i: (0, i)),
        pl.BlockSpec((Cout, 9 * Cin), lambda i: (0, 0)),
        pl.BlockSpec((Cout, 1), lambda i: (0, 0)),
        pl.BlockSpec((Cout, Cout), lambda i: (0, 0)),
        pl.BlockSpec((Cout, 1), lambda i: (0, 0)),
    ]
    if not identity_skip:
        in_specs += [pl.BlockSpec((Cout, Cin), lambda i: (0, 0)),
                     pl.BlockSpec((Cout, 1), lambda i: (0, 0))]

    kern = functools.partial(_resblock_kernel, cin=Cin, identity_skip=identity_skip)
    out2d = pl.pallas_call(
        kern,
        out_shape=jax.ShapeDtypeStruct((Cout, NPp), x_nchw.dtype),
        grid=(NPp // TP,),
        in_specs=in_specs,
        out_specs=pl.BlockSpec((Cout, TP), lambda i: (0, i)),
        compiler_params=pltpu.CompilerParams(
            dimension_semantics=("parallel",),
            vmem_limit_bytes=vmem_limit),
    )(*args)

    # (Cout, N*Mo) -> NCHW.  One small XLA transpose; kernel stores stay lane-dense.
    out = out2d[:, :NP].reshape(Cout, N, Ho, Wo)
    return jnp.transpose(out, (1, 0, 2, 3))


# -------------------------- parameters & reference -------------------------- #

def _bn_params(key, c):
    k1, k2, k3, k4 = jax.random.split(key, 4)
    gamma = 1.0 + 0.1 * jax.random.normal(k1, (c,), jnp.float32)
    beta = 0.1 * jax.random.normal(k2, (c,), jnp.float32)
    mean = 0.1 * jax.random.normal(k3, (c,), jnp.float32)
    var = 1.0 + 0.1 * jnp.abs(jax.random.normal(k4, (c,), jnp.float32))
    return gamma, beta, mean, var


def _fold_bn(gamma, beta, mean, var, eps=1e-5):
    scale = gamma / jnp.sqrt(var + eps)
    bias = beta - mean * scale
    return scale, bias


def init_resblock_params(key, in_channels, out_channels, stride=None):
    """Matches ResBlock.__init__: stride = 1 if in >= out else 2; skip = Identity or
    Conv1x1(stride)+BN.  Conv weights kept in PyTorch layouts (OIHW / (out, in))."""
    stride = stride or (1 if in_channels >= out_channels else 2)
    keys = jax.random.split(key, 6)

    def w(k, shape):
        return 0.3 * jax.random.normal(k, shape, jnp.float32)

    params = {
        "stride": int(stride),
        "w1": w(keys[0], (out_channels, in_channels, 3, 3)),     # conv3x3, OIHW
        "bn1": _fold_bn(*_bn_params(keys[1], out_channels)),
        "w2": w(keys[2], (out_channels, out_channels)),          # conv1x1, (out, in)
        "bn2": _fold_bn(*_bn_params(keys[3], out_channels)),
    }
    if not (stride == 1 and in_channels == out_channels):
        params["ws"] = w(keys[4], (out_channels, in_channels))   # skip conv1x1
        params["bn_s"] = _fold_bn(*_bn_params(keys[5], out_channels))
    return params


def resblock_reference(params, x_nchw):
    """Pure-JAX (XLA) reference for the same folded-BN ResBlock forward."""
    st = params["stride"]
    hp = jax.lax.Precision.HIGHEST

    def conv(x, w, stride, padding):
        return jax.lax.conv_general_dilated(
            x, w, window_strides=(stride, stride), padding=padding,
            dimension_numbers=("NCHW", "OIHW", "NCHW"), precision=hp)

    def bn(x, sbias):
        s, b = sbias
        return x * s[None, :, None, None] + b[None, :, None, None]

    h = jax.nn.relu(bn(conv(x_nchw, params["w1"], st, ((1, 1), (1, 1))), params["bn1"]))
    h = bn(conv(h, params["w2"][:, :, None, None], 1, "VALID"), params["bn2"])
    if "ws" in params:
        sk = bn(conv(x_nchw, params["ws"][:, :, None, None], st, "VALID"),
                params["bn_s"])
    else:
        sk = x_nchw
    return jax.nn.relu(h + sk)


# ----------------------------------- main ----------------------------------- #

if __name__ == "__main__":
    key = jax.random.PRNGKey(0)
    k_id, k_dn, k_x = jax.random.split(key, 3)

    N, Cin, H, W = 2, 4, 16, 16
    x = jax.random.normal(k_x, (N, Cin, H, W), jnp.float32)     # PyTorch-style NCHW

    # ResBlock(4, 4): stride 1, identity skip (fast path: no skip matmul).
    p_id = init_resblock_params(k_id, Cin, Cin)
    # ResBlock(4, 8): stride 2, conv-1x1 downsample skip (strided im2col, no selector).
    p_dn = init_resblock_params(k_dn, Cin, 2 * Cin)

    for p in (p_id, p_dn):
        out = jax.block_until_ready(resblock_forward(p, x))
        ref = jax.block_until_ready(resblock_reference(p, x))
        assert out.shape == ref.shape, (out.shape, ref.shape)
        np.testing.assert_allclose(np.asarray(out), np.asarray(ref),
                                   rtol=1e-2, atol=1e-2)

    # bf16-operand / f32-accumulate path (v6e/v7x bandwidth lever; f32 epilogue kept
    # so the same kernel is v5e-safe).  Skip residual is bf16 here -> loose tolerance.
    out_bf16 = jax.block_until_ready(
        resblock_forward(p_dn, x, compute_dtype=jnp.bfloat16))
    ref_dn = jax.block_until_ready(resblock_reference(p_dn, x))
    np.testing.assert_allclose(np.asarray(out_bf16), np.asarray(ref_dn),
                               rtol=6e-2, atol=6e-2)

    print("KERNEL_OK")
</pallas_src>

<mosaic_0001>
module attributes {stable_mosaic.version = 11 : i64} {
  func.func @_resblock_kernel(%arg0: i32, %arg1: memref<36x256xf32, #tpu.memory_space<vmem>>, %arg2: memref<4x36xf32, #tpu.memory_space<vmem>>, %arg3: memref<4x1xf32, #tpu.memory_space<vmem>>, %arg4: memref<4x4xf32, #tpu.memory_space<vmem>>, %arg5: memref<4x1xf32, #tpu.memory_space<vmem>>, %arg6: memref<4x256xf32, #tpu.memory_space<vmem>>) attributes {dimension_semantics = [#tpu.dimension_semantics<parallel>], iteration_bounds = array<i64: 2>, scalar_prefetch = 0 : i64, scratch_operands = 0 : i64, tpu.core_type = #tpu.core_type<tc>, window_params = [{transform_indices = @transform_0, window_bounds = array<i64: 36, 256>}, {pipeline_mode = #tpu.pipeline_mode<synchronous>, transform_indices = @transform_1, window_bounds = array<i64: 4, 36>}, {pipeline_mode = #tpu.pipeline_mode<synchronous>, transform_indices = @transform_2, window_bounds = array<i64: 4, 1>}, {pipeline_mode = #tpu.pipeline_mode<synchronous>, transform_indices = @transform_3, window_bounds = array<i64: 4, 4>}, {pipeline_mode = #tpu.pipeline_mode<synchronous>, transform_indices = @transform_4, window_bounds = array<i64: 4, 1>}, {transform_indices = @transform_5, window_bounds = array<i64: 4, 256>}]} {
    %c0 = arith.constant 0 : index
    %c0_0 = arith.constant 0 : index
    %0 = vector.load %arg1[%c0, %c0_0] : memref<36x256xf32, #tpu.memory_space<vmem>>, vector<36x256xf32>
    %c0_1 = arith.constant 0 : index
    %c0_2 = arith.constant 0 : index
    %1 = vector.load %arg2[%c0_1, %c0_2] : memref<4x36xf32, #tpu.memory_space<vmem>>, vector<4x36xf32>
    %c0_3 = arith.constant 0 : index
    %c0_4 = arith.constant 0 : index
    %2 = vector.load %arg4[%c0_3, %c0_4] : memref<4x4xf32, #tpu.memory_space<vmem>>, vector<4x4xf32>
    %cst = arith.constant dense<0.000000e+00> : vector<4x256xf32>
    %3 = tpu.matmul %1, %0, %cst {dimension_numbers = #tpu.dot_dimension_numbers<[1], [0], [0], [1], [0, 0, 1, 1], [], []>} : vector<4x36xf32>, vector<36x256xf32>, vector<4x256xf32> -> vector<4x256xf32>
    %c0_5 = arith.constant 0 : index
    %c0_6 = arith.constant 0 : index
    %4 = vector.load %arg3[%c0_5, %c0_6] : memref<4x1xf32, #tpu.memory_space<vmem>>, vector<4x1xf32>
    %5 = vector.broadcast %4 : vector<4x1xf32> to vector<4x256xf32>
    %6 = arith.addf %3, %5 : vector<4x256xf32>
    %cst_7 = arith.constant 0.000000e+00 : f32
    %7 = vector.broadcast %cst_7 : f32 to vector<4x256xf32>
    %8 = arith.maximumf %6, %7 : vector<4x256xf32>
    %cst_8 = arith.constant dense<0.000000e+00> : vector<4x256xf32>
    %9 = tpu.matmul %2, %8, %cst_8 {dimension_numbers = #tpu.dot_dimension_numbers<[1], [0], [0], [1], [0, 0, 1, 1], [], []>} : vector<4x4xf32>, vector<4x256xf32>, vector<4x256xf32> -> vector<4x256xf32>
    %c0_9 = arith.constant 0 : index
    %c0_10 = arith.constant 0 : index
    %10 = vector.load %arg5[%c0_9, %c0_10] : memref<4x1xf32, #tpu.memory_space<vmem>>, vector<4x1xf32>
    %11 = vector.broadcast %10 : vector<4x1xf32> to vector<4x256xf32>
    %12 = arith.addf %9, %11 : vector<4x256xf32>
    %13 = vector.extract_strided_slice %0 {offsets = [16, 0], sizes = [4, 256], strides = [1, 1]} : vector<36x256xf32> to vector<4x256xf32>
    %14 = arith.addf %12, %13 : vector<4x256xf32>
    %cst_11 = arith.constant 0.000000e+00 : f32
    %15 = vector.broadcast %cst_11 : f32 to vector<4x256xf32>
    %16 = arith.maximumf %14, %15 : vector<4x256xf32>
    %c0_12 = arith.constant 0 : index
    %c0_13 = arith.constant 0 : index
    %17 = vector.load %arg6[%c0_12, %c0_13] : memref<4x256xf32, #tpu.memory_space<vmem>>, vector<4x256xf32>
    tpu.vector_store %arg6[%c0_12, %c0_13], %16 {strides = array<i32>} : memref<4x256xf32, #tpu.memory_space<vmem>>, vector<4x256xf32>,
    return
  }
  func.func @transform_0(%arg0: i32) -> (i32, i32) {
    %c0_i32 = arith.constant 0 : i32
    %c0_i32_0 = arith.constant 0 : i32
    return %c0_i32, %arg0 : i32, i32
  }
  func.func @transform_1(%arg0: i32) -> (i32, i32) {
    %c0_i32 = arith.constant 0 : i32
    %c0_i32_0 = arith.constant 0 : i32
    %c0_i32_1 = arith.constant 0 : i32
    return %c0_i32, %c0_i32_0 : i32, i32
  }
  func.func @transform_2(%arg0: i32) -> (i32, i32) {
    %c0_i32 = arith.constant 0 : i32
    %c0_i32_0 = arith.constant 0 : i32
    %c0_i32_1 = arith.constant 0 : i32
    return %c0_i32, %c0_i32_0 : i32, i32
  }
  func.func @transform_3(%arg0: i32) -> (i32, i32) {
    %c0_i32 = arith.constant 0 : i32
    %c0_i32_0 = arith.constant 0 : i32
    %c0_i32_1 = arith.constant 0 : i32
    return %c0_i32, %c0_i32_0 : i32, i32
  }
  func.func @transform_4(%arg0: i32) -> (i32, i32) {
    %c0_i32 = arith.constant 0 : i32
    %c0_i32_0 = arith.constant 0 : i32
    %c0_i32_1 = arith.constant 0 : i32
    return %c0_i32, %c0_i32_0 : i32, i32
  }
  func.func @transform_5(%arg0: i32) -> (i32, i32) {
    %c0_i32 = arith.constant 0 : i32
    %c0_i32_0 = arith.constant 0 : i32
    return %c0_i32, %arg0 : i32, i32
  }
}

</mosaic_0001>

<bundles_post_ra>
// kernel: tpu_custom_call.1
= control target key start
LH: loop header
LB: loop body
LE: loop exit
PB: predicated region body
PF: predicated region fallthrough
CT: control target
= control target key end

     0   :  { %10 = vsyncpa [#allocation3], 0  ;;  %s815_s0 = inlined_call_operand.hbm [shape: f32[36,512], index: 0, kind: input, shape index: {}]   ;;  %s816_s1 = inlined_call_operand.vmem [shape: f32[4,36], index: 1, kind: input, shape index: {}]   ;;  %s817_s2 = inlined_call_operand.vmem [shape: f32[4,1], index: 2, kind: input, shape index: {}]   ;;  %s818_s3 = inlined_call_operand.vmem [shape: f32[4,4], index: 3, kind: input, shape index: {}]   ;;  %s819_s4 = inlined_call_operand.vmem [shape: f32[4,1], index: 4, kind: input, shape index: {}]   ;;  %s820_s5 = inlined_call_operand.hbm [shape: f32[4,512], index: 5, kind: output, shape index: {}]  }
   0x1   :  { %12 = vsyncpa [#allocation3 + $0x1], 0 }
   0x2   :  { %13 = vsyncpa [#allocation4], 0 }
   0x3   :  { %15 = vsyncpa [#allocation4 + $0x1], 0  ;;  %s678_s18 = smov 0   ;;  %s680_s19 = smov 0  }
   0x4   :  { %s682_s20 = smov 0   ;;  %s684_s21 = smov 0  }
   0x5 LB: > { %s699_s22 = sadd.s32 4294967295, %s642_s21   ;;  %s471_s23 = sadd.s32 4294967294, %s642_s21   ;;  %s642_s21 = sphi %s684_s21, %s828_s21   ;;  %s638_s20 = sphi %s682_s20, %s827_s20   ;;  %s634_s19 = sphi %s680_s19, %s826_s19   ;;  %s630_s18 = sphi %s678_s18, %s825_s18  }
   0x6   : > { %s703_s24 = sadd.s32 1, %s642_s21   ;;  %s28_s25 = sadd.s32 1, %s638_s20 }
   0x7   : > { %s25_s26 = ssub.s32 %s642_s21, %s703_s24  ;;  %p35_p0 = scmp.ne.s32.totalorder %s638_s20, %s634_s19 }
   0x8   : > { %p26_p1 = scmp.eq.s32.totalorder %s25_s26, 0  ;;  %p36_p2 = scmp.eq.s32.totalorder %s642_s21, 0 }
   0x9   : > { %p41_p3 = scmp.ne.s32.totalorder %s634_s19, %s630_s18  ;;  %p42_p4 = scmp.eq.s32.totalorder %s699_s22, 0 }
   0xa   : > { %s715_s27 = scalar_select %p26_p1, %s638_s20, %s28_s25  }
   0xb   : > { %p37_p5 = por %p36_p2, %p35_p0  ;;  %p717_p6 = por %p42_p4, %p41_p3 }
   0xc   : > { %p149_p7 = scmp.eq.s32.totalorder %s699_s22, 1  ;;  %p155_p8 = scmp.eq.s32.totalorder %s471_s23, 1 }
   0xd   : > { %p473_p9 = scmp.ge.s32.totalorder %s642_s21, 2  ;;  %p507_p10 = scmp.lt.s32.totalorder %s642_s21, 2 }
   0xe   : > { %p724_p11 = por %p149_p7, %p35_p0  ;;  %p728_p12 = por %p155_p8, %p41_p3 }
   0xf   : > { %s187_s6 = sand.u32 1, %s638_s20   ;;  %s491_s7 = sshll.u32 %s642_s21, 4 }
  0x10   : > { %s493_s8 = smul.u32 80, %s187_s6  ;;  %s196_s11 = scalar_lea.hbm %s815_s0, %s491_s7 }
  0x11   : > { %p737_p13 = pnand %p507_p10, %p37_p5  ;;  %s197_s13 = sshll.u32 %s196_s11, 4  ;;  %s198_s13 = int_to_ptr.hbm [resolvable:$true] %s197_s13 }
  0x12   : > { %s191_s14 = scalar_lea.vmem [#allocation2], %s493_s8  ;;  %p476_p0 = scmp.ge.s32.totalorder %s642_s21, 1 }
  0x13   : > { %s199_s15 = sshll.u32 %s191_s14, 4  ;;  %s188_s16 = scalar_lea.sflag [#allocation3], %s187_s6  ;;  %s200_s15 = int_to_ptr.vmem [resolvable:$true] %s199_s15 }
  0x14   : > { %s546_s17 = sshra.s32 %s198_s13, 4  ;;  %p550_p2 = pneg %p737_p13  ;;  %s547_s17 = int_to_ptr.hbm [resolvable:$true] %s546_s17 }
  0x15   : > { %s548_s23 = scalar_lea.hbm %s547_s17, 80  ;;  %s553_s7 = scalar_lea.hbm %s815_s0, 160 }
  0x16   : > { %p549_p1 = scmp.ne.s32.totalorder %s547_s17, %s548_s23  ;;  %p554_p5 = scmp.lt.s32.totalorder %s547_s17, %s815_s0 }
  0x17   : > { %p555_p7 = scmp.lt.s32.totalorder %s553_s7, %s548_s23 }
  0x18   : > { %p551_p3 = pnand %p550_p2, %p549_p1 }
  0x19   : > { %p556_p8 = por %p555_p7, %p554_p5 }
  0x1a   : > { %p552_p4 = pneg %p551_p3 }
  0x1c   : > { %p557_p10 = pnand %p556_p8, %p552_p4 }
  0x1e   : > { %560 = shalt.err (!%p557_p10)
}
  0x1f   : > { %s644_s6 = smov 512   ;;  %s645_s8 = smov 256  }
  0x20   : > { %s646_s11 = smov 16   ;;  %p207_p1 = scmp.lt.s32.totalorder %s642_s21, 3 }
  0x21   : > { %502 = dma.hbm_to_vmem [thread:$0]  (!%p737_p13), %s198_s13, 1280, %s200_s15, %s188_s16, %s644_s6, %s645_s8, %s646_s11  }
  0x22   : > { %p208_p2 = pnand %p476_p0, %p207_p1 }
  0x23   : > { %s756_s14 = sand.u32 (!%p208_p2), 1, %s634_s19  }
  0x24   : > { %211 = sbr.rel (%p208_p2) target bundleno = 328 (0x148), region = 40  ;;  %s214_s23 = scalar_lea.sflag (!%p208_p2), [#allocation3], %s756_s14 }
  0x25   : > { %s494_s17 = smul.u32 (!%p208_p2), 80, %s756_s14 }
  0x27   : > { %s217_s25 = scalar_lea.vmem (!%p208_p2), [#allocation2], %s494_s17 }
  0x29   : > { %621 = dma.done.wait (%p717_p6), %s214_s23, 1280  }
  0x2a   : > { %623 = vsyncadd (%p717_p6), %s214_s23, 4294966016  ;;  %v647_v0 = vmov 0   ;;  %vm269_vm0 = vcmask 1043456   ;;  %v255_v1 = vld [vmem:[%s217_s25 + $0x40] sm:$0xf]  ;;  %v253_v3 = vld [vmem:[%s217_s25 + $0x30] sm:$0xff] }
  0x2b   : > { %545 = vset.pattern.permute.xlu0 %v647_v0  ;;  %v256_v2 = vld [vmem:[%s217_s25 + $0x48] sm:$0xf]  ;;  %478 = vmatpush.msk.msra.mxu0 %vm269_vm0, %v255_v1  ;;  %v254_v4 = vld [vmem:[%s217_s25 + $0x38] sm:$0xff]  ;;  %v251_v5 = vld [vmem:[%s217_s25 + $0x20] sm:$0xff]  ;;  %vm265_vm1 = vcmask 293888   ;;  %vm324_vm2 = vcmask 31744  }
  0x2c   : > { %480 = vmatpush.msk.msra.mxu1 %vm269_vm0, %v256_v2  ;;  %v252_v6 = vld [vmem:[%s217_s25 + $0x28] sm:$0xff]  ;;  %v259_v7 = vld [vmem:[%s817_s2] sm:$0xf]  ;;  %v250_v9 = vld [vmem:[%s217_s25 + $0x18] sm:$0xff]  ;;  %s477_s10 = sshll.u32 %s756_s14, 3  ;;  %s492_s6 = sshll.u32 %s699_s22, 3 }
  0x2d   : > { %288 = vmatpush.msra.mxu0 %v253_v3  ;;  %v249_v8 = vld [vmem:[%s217_s25 + $0x10] sm:$0xff]  ;;  %262 = vperm.xlu0 %545, %v259_v7   ;;  %v247_v10 = vld [vmem:[%s217_s25] sm:$0xff]  ;;  %v248_v11 = vld [vmem:[%s217_s25 + $0x8] sm:$0xff]  ;;  %s396_s17 = scalar_lea.hbm %s820_s5, %s492_s6  ;;  %s244_s23 = scalar_lea.vmem [#allocation5], %s477_s10 }
  0x2e   : > { %308 = vmatpush.msra.mxu1 %v254_v4  ;;  %v257_v12 = vld [vmem:[%s816_s1] sm:$0xf]  ;;  %s398_s25 = sshll.u32 %s244_s23, 4  ;;  %s400_s12 = sshll.u32 %s396_s17, 4  ;;  %s399_s25 = int_to_ptr.vmem [resolvable:$true] %s398_s25  ;;  %s401_s12 = int_to_ptr.hbm [resolvable:$true] %s400_s12 }
  0x2f   : > { %289 = vmatpush.msra.mxu0 %v251_v5  ;;  %v318_v13 = vld [vmem:[%s819_s4] sm:$0xf]  ;;  %s385_s22 = scalar_lea.sflag [#allocation4], %s756_s14  ;;  %s590_s13 = sshra.s32 %s401_s12, 4  ;;  %s591_s13 = int_to_ptr.hbm [resolvable:$true] %s590_s13 }
  0x30   : > { %309 = vmatpush.msra.mxu1 %v252_v6  ;;  %v258_v21 = vld [vmem:[%s818_s3] sm:$0xf]  ;;  %s592_s28 = scalar_lea.hbm %s591_s13, 8  ;;  %s596_s26 = scalar_lea.hbm %s820_s5, 16 }
  0x31   : > { %290 = vmatpush.msra.mxu0 %v249_v8  ;;  %p593_p6 = scmp.ne.s32.totalorder %s591_s13, %s592_s28  ;;  %p597_p3 = scmp.lt.s32.totalorder %s591_s13, %s820_s5 }
  0x32   : > { %310 = vmatpush.msra.mxu1 %v250_v9  ;;  %p598_p4 = scmp.lt.s32.totalorder %s596_s26, %s592_s28 }
  0x33   : > { %291 = vmatpush.msra.mxu0 %v247_v10  ;;  %p594_p13 = pnand %p593_p6, %p724_p11 }
  0x34   : > { %311 = vmatpush.msra.mxu1 %v248_v11  ;;  %479 = vmatmul.msk.f32.vlgmr.msra.gmra.mxu0 %vm265_vm1, %v257_v12  ;;  %p599_p5 = por %p598_p4, %p597_p3 }
  0x35   : > { %481 = vmatmul.msk.f32.vlgmr.msra.gmra.mxu1 %vm265_vm1, %v257_v12  ;;  %321 = vperm.xlu0 %545, %v318_v13   ;;  %p595_p0 = pneg %p594_p13 }
  0x37   : > { %p600_p7 = pnand %p599_p5, %p595_p0 }
  0x9f   : > { %v263_v14 = vpop.permute.xlu0 %262 }
  0xa7   : > { %v322_v22 = vpop.permute.xlu0 %321 }
  0xb1   : > { %v293_v15 = vpop.f32.mrf.mxu0 }
  0xb2   : > { %v313_v16 = vpop.f32.mrf.mxu1  ;;  %v294_v17 = vadd.f32 %v293_v15, %v263_v14 }
  0xb3   : > { %v314_v18 = vadd.f32 %v313_v16, %v263_v14 }
  0xb4   : > { %v316_v19 = vmax.f32 %v294_v17, 0.0 }
  0xb5   : > { %v317_v20 = vmax.f32 %v314_v18, 0.0 }
  0xb6   : > { %482 = vmatpush.msk.msra.mxu2 %vm269_vm0, %v316_v19 }
  0xb7   : > { %484 = vmatpush.msk.msra.mxu3 %vm269_vm0, %v317_v20  ;;  %483 = vmatmul.msk.f32.vlgmr.msra.gmra.mxu2 %vm324_vm2, %v258_v21 }
  0xb8   : > { %485 = vmatmul.msk.f32.vlgmr.msra.gmra.mxu3 %vm324_vm2, %v258_v21 }
 0x13a   : > { %v351_v23 = vpop.f32.mrf.mxu2 }
 0x13b   : > { %v371_v24 = vpop.f32.mrf.mxu3  ;;  %v352_v25 = vadd.f32 %v351_v23, %v322_v22 }
 0x13c   : > { %v372_v26 = vadd.f32 %v371_v24, %v322_v22 }
 0x13d   : > { %v374_v27 = vadd.f32 %v352_v25, %v251_v5 }
 0x13e   : > { %v375_v28 = vadd.f32 %v372_v26, %v252_v6 }
 0x13f   : > { %v376_v30 = vmax.f32 %v374_v27, 0.0 }
 0x140   : > { %v377_v29 = vmax.f32 %v375_v28, 0.0 }
 0x142   : > { %v380_v31 = vrot.slane %v377_v29, 4 }
 0x144   : > { %v381_v32 = vsel %vm269_vm0, %v376_v30, %v380_v31 }
 0x145   : > { %383 = vst [vmem:[%s244_s23] sm:$0xff] %v381_v32 }
 0x146   : > { %603 = shalt.err (!%p600_p7)
}
 0x147   : > { %497 = dma.vmem_to_hbm [thread:$0]  (%p724_p11), %s399_s25, 128, %s401_s12, %s385_s22  }
 0x148 PF: > { %s412_s14 = sand.u32 1, %s630_s18   ;;  %p504_p8 = pnand %p473_p9, %p728_p12 }
 0x149   : > { %s413_s10 = scalar_lea.sflag [#allocation4], %s412_s14 }
 0x14a   : > { %p505_p10 = pneg %p504_p8 }
 0x14c   : > { %625 = dma.done.wait (%p505_p10), %s413_s10, 128  }
 0x14d   : > { %627 = vsyncadd (%p505_p10), %s413_s10, 4294967168  ;;  %p18_p1 = scmp.ge.s32.totalorder %s703_s24, 4   ;;  %s825_s18 = smov %s634_s19 }
 0x14e   : > { %s826_s19 = smov %s638_s20  ;;  %s827_s20 = smov %s715_s27 }
 0x14f   : > { %s828_s21 = smov %s703_s24  ;;  %20 = sbr.rel (!%p18_p1) target bundleno = 5 (0x5), region = 85 }
 0x154   :  { %419 = vsyncpa [#allocation3], 1 }
 0x155   :  { %421 = vsyncpa [#allocation3 + $0x1], 1 }
 0x156   :  { %422 = vsyncpa [#allocation4], 1 }
 0x157   :  { %424 = vsyncpa [#allocation4 + $0x1], 1 }

</bundles_post_ra>
